<compile_context>
chip_gen: v6e
topology: v6e:2x2x1
jax: 0.10.0
libtpu: 0.0.40
codegen_flags: <defaults>
</compile_context>

<pallas_src>
import functools

import jax
import jax.numpy as jnp
from jax.experimental import pallas as pl
from jax.experimental.pallas import tpu as pltpu


def _shifted(x, off):
    """y[:, t, :] = x[:, t + off, :], zero outside the valid time range."""
    Bt, L, R = x.shape
    if off == 0:
        return x
    if off >= L or -off >= L:
        return jnp.zeros_like(x)
    if off > 0:
        pad = jnp.zeros((Bt, off, R), x.dtype)
        return jnp.concatenate([x[:, off:, :], pad], axis=1)
    o = -off
    pad = jnp.zeros((Bt, o, R), x.dtype)
    return jnp.concatenate([pad, x[:, :L - o, :]], axis=1)


def _drb_kernel(x_ref, cond_ref, w1_ref, w2_ref, out_ref, *,
                K, dilation, compute_dtype):
    """One batch tile per grid step.

    x_ref    : (Bt, L, R)        un-padded input, channel-last, f32
    cond_ref : (Bt, 1, 2R)       pre-projected conditioning, f32
    w1_ref   : (K*R, 2R)         dilated-conv taps folded on the contraction axis
    w2_ref   : (R, R+S)          1x1 conv weight (in, out)
    out_ref  : (Bt, L, R+S)      [residual | skip] combined slab
    """
    Bt, L, R = x_ref.shape
    x = x_ref[...]                                           # (Bt, L, R) f32

    # --- dilated conv1: K shifted views concatenated -> single MXU matmul ---
    taps = [_shifted(x, (k - 1) * dilation) for k in range(K)]
    xcat = jnp.concatenate(taps, axis=-1).astype(compute_dtype)   # (Bt, L, K*R)

    z = jnp.dot(xcat.reshape(Bt * L, K * R), w1_ref[...],
                preferred_element_type=jnp.float32)               # (Bt*L, 2R)
    z = z.reshape(Bt, L, 2 * R) + cond_ref[...]                   # + (Bt, 1, 2R)

    # --- gated activation (sigmoid rewritten via tanh: fewer EUP ops) ---
    tanh_out = jnp.tanh(z[..., :R])
    sigm_out = 0.5 * jnp.tanh(0.5 * z[..., R:]) + 0.5
    gate = (tanh_out * sigm_out).astype(compute_dtype)            # (Bt, L, R)

    # --- 1x1 conv2 -> combined (res | skip) slab ---
    out2 = jnp.dot(gate.reshape(Bt * L, R), w2_ref[...],
                   preferred_element_type=jnp.float32)            # (Bt*L, R+S)
    out2 = out2.reshape(Bt, L, out2.shape[-1])

    res = out2[..., :R] + x                                       # f32 residual add
    out_ref[...] = jnp.concatenate([res, out2[..., R:]],
                                   axis=-1).astype(out_ref.dtype)


def dilated_residual_block(data_x, condition_x, params, *, dilation,
                           samples_of_interest_indices,
                           compute_dtype=jnp.bfloat16, batch_tile=None):
    """data_x: (B, R, L) NCL; condition_x: (B, Ccond). Returns (res, skip) in NCL."""
    w1_t = params["conv1"]   # torch layout (2R, R, K)
    wc_t = params["fc1"]     # torch layout (2R, Ccond)
    w2_t = params["conv2"]   # torch layout (R+S, R, 1)

    B, R, L = data_x.shape
    K = w1_t.shape[2]
    S = w2_t.shape[0] - R
    t0 = samples_of_interest_indices[0]
    T = samples_of_interest_indices[-1] + 1 - t0

    # Channel-last activations; no padded HBM copy (halo made in-kernel).
    x_cl = jnp.transpose(data_x, (0, 2, 1))                        # (B, L, R)

    # Conditioning projection hoisted out of the kernel: one batched gemm.
    cond_out = (condition_x @ wc_t.T).astype(jnp.float32).reshape(B, 1, 2 * R)

    # Weights in (in, out) matmul layout; K taps folded into the contraction.
    w1 = jnp.transpose(w1_t, (2, 1, 0)).reshape(K * R, 2 * R).astype(compute_dtype)
    w2 = jnp.transpose(w2_t[:, :, 0], (1, 0)).astype(compute_dtype)   # (R, R+S)

    if batch_tile is None:
        # Fold batch into the matmul M dim until M ~ 512 rows; beyond that keep
        # the grid large so the pipeline has steps (and v7x can shard cores).
        # Flattening (Bt, L, C)->(Bt*L, C) needs L % 8 == 0 for a free relayout.
        if L % 8 == 0:
            target = max(1, -(-512 // L))
            batch_tile = 1
            for cand in range(min(B, target), 0, -1):
                if B % cand == 0:
                    batch_tile = cand
                    break
        else:
            batch_tile = 1
    assert B % batch_tile == 0, "batch_tile must divide batch"
    grid = (B // batch_tile,)

    kernel = functools.partial(_drb_kernel, K=K, dilation=dilation,
                               compute_dtype=compute_dtype)

    out = pl.pallas_call(
        kernel,
        out_shape=jax.ShapeDtypeStruct((B, L, R + S), data_x.dtype),
        grid_spec=pltpu.PrefetchScalarGridSpec(
            num_scalar_prefetch=0,
            grid=grid,
            in_specs=[
                pl.BlockSpec((batch_tile, L, R), lambda b: (b, 0, 0)),
                pl.BlockSpec((batch_tile, 1, 2 * R), lambda b: (b, 0, 0)),
                pl.BlockSpec((K * R, 2 * R), lambda b: (0, 0)),
                pl.BlockSpec((R, R + S), lambda b: (0, 0)),
            ],
            out_specs=pl.BlockSpec((batch_tile, L, R + S), lambda b: (b, 0, 0)),
        ),
        compiler_params=pltpu.CompilerParams(
            dimension_semantics=("parallel",)),
    )(x_cl, cond_out, w1, w2)

    # TODO(synk): for production L (multiple of 128) emit res directly in
    # (B, R, L) layout inside the kernel to drop these output transposes.
    res = jnp.transpose(out[..., :R], (0, 2, 1))                   # (B, R, L)
    skip = jnp.transpose(out[:, t0:t0 + T, R:], (0, 2, 1))         # (B, S, T)
    return res, skip


def _reference(data_x, condition_x, params, *, dilation, soi):
    """Pure-JAX reference mirroring the PyTorch forward (NCL conv semantics)."""
    w1_t, wc_t, w2_t = params["conv1"], params["fc1"], params["conv2"]
    B, R, L = data_x.shape
    out = jax.lax.conv_general_dilated(
        data_x, w1_t, window_strides=(1,), padding=[(dilation, dilation)],
        rhs_dilation=(dilation,), dimension_numbers=("NCH", "OIH", "NCH"))
    cond = condition_x @ wc_t.T                      # (B, 2R)
    out = out + cond[:, :, None]
    gate = jnp.tanh(out[:, :R]) * jax.nn.sigmoid(out[:, R:2 * R])
    out2 = jax.lax.conv_general_dilated(
        gate, w2_t, (1,), [(0, 0)], dimension_numbers=("NCH", "OIH", "NCH"))
    res = out2[:, :R] + data_x
    skip = out2[:, R:, soi[0]:soi[-1] + 1]
    return res, skip


if __name__ == "__main__":
    # small config consistent with the module:
    #   res depth R=32, skip depth S=16, res filter length K=3,
    #   dilation=2, input_length L=16, condition_input_length=8,
    #   samples_of_interest = 4..11
    B, R, S, K, L, Ccond = 2, 32, 16, 3, 16, 8
    dilation = 2
    soi = list(range(4, 12))

    key = jax.random.PRNGKey(0)
    k_x, k_c, k_w1, k_wc, k_w2 = jax.random.split(key, 5)

    data_x = jax.random.normal(k_x, (B, R, L), jnp.float32)
    condition_x = jax.random.normal(k_c, (B, Ccond), jnp.float32)

    params = {
        "conv1": 0.1 * jax.random.normal(k_w1, (2 * R, R, K), jnp.float32),
        "fc1":   0.1 * jax.random.normal(k_wc, (2 * R, Ccond), jnp.float32),
        "conv2": 0.1 * jax.random.normal(k_w2, (R + S, R, 1), jnp.float32),
    }

    res_ref, skip_ref = _reference(data_x, condition_x, params,
                                   dilation=dilation, soi=soi)

    # f32 compute path: tight semantics check against the reference.
    res32, skip32 = dilated_residual_block(
        data_x, condition_x, params, dilation=dilation,
        samples_of_interest_indices=soi, compute_dtype=jnp.float32)
    jax.block_until_ready((res32, skip32))
    assert res32.shape == (B, R, L) and skip32.shape == (B, S, len(soi))
    assert jnp.allclose(res32, res_ref, atol=1e-4, rtol=1e-4)
    assert jnp.allclose(skip32, skip_ref, atol=1e-4, rtol=1e-4)

    # bf16 MXU path (production dtype on v6e/v7x): looser tolerance.
    res16, skip16 = dilated_residual_block(
        data_x, condition_x, params, dilation=dilation,
        samples_of_interest_indices=soi, compute_dtype=jnp.bfloat16)
    jax.block_until_ready((res16, skip16))
    assert jnp.allclose(res16, res_ref, atol=5e-2, rtol=5e-2)
    assert jnp.allclose(skip16, skip_ref, atol=5e-2, rtol=5e-2)

    print("KERNEL_OK")
</pallas_src>

<mosaic_0001>
module attributes {stable_mosaic.version = 11 : i64} {
  func.func @_drb_kernel(%arg0: i32, %arg1: memref<2x16x32xf32, #tpu.memory_space<vmem>>, %arg2: memref<2x1x64xf32, #tpu.memory_space<vmem>>, %arg3: memref<96x64xf32, #tpu.memory_space<vmem>>, %arg4: memref<32x48xf32, #tpu.memory_space<vmem>>, %arg5: memref<2x16x48xf32, #tpu.memory_space<vmem>>) attributes {dimension_semantics = [#tpu.dimension_semantics<parallel>], iteration_bounds = array<i64: 1>, scalar_prefetch = 0 : i64, scratch_operands = 0 : i64, tpu.core_type = #tpu.core_type<tc>, window_params = [{transform_indices = @transform_0, window_bounds = array<i64: 2, 16, 32>}, {transform_indices = @transform_1, window_bounds = array<i64: 2, 1, 64>}, {pipeline_mode = #tpu.pipeline_mode<synchronous>, transform_indices = @transform_2, window_bounds = array<i64: 96, 64>}, {pipeline_mode = #tpu.pipeline_mode<synchronous>, transform_indices = @transform_3, window_bounds = array<i64: 32, 48>}, {transform_indices = @transform_4, window_bounds = array<i64: 2, 16, 48>}]} {
    %c0 = arith.constant 0 : index
    %c0_0 = arith.constant 0 : index
    %c0_1 = arith.constant 0 : index
    %0 = vector.load %arg1[%c0, %c0_0, %c0_1] : memref<2x16x32xf32, #tpu.memory_space<vmem>>, vector<2x16x32xf32>
    %cst = arith.constant 0.000000e+00 : f32
    %1 = vector.broadcast %cst : f32 to vector<2x2x32xf32>
    %2 = vector.extract_strided_slice %0 {offsets = [0, 0, 0], sizes = [2, 14, 32], strides = [1, 1, 1]} : vector<2x16x32xf32> to vector<2x14x32xf32>
    %3 = tpu.concatenate %1, %2 in 1 : vector<2x2x32xf32>, vector<2x14x32xf32> -> vector<2x16x32xf32>
    %cst_2 = arith.constant 0.000000e+00 : f32
    %4 = vector.broadcast %cst_2 : f32 to vector<2x2x32xf32>
    %5 = vector.extract_strided_slice %0 {offsets = [0, 2, 0], sizes = [2, 14, 32], strides = [1, 1, 1]} : vector<2x16x32xf32> to vector<2x14x32xf32>
    %6 = tpu.concatenate %5, %4 in 1 : vector<2x14x32xf32>, vector<2x2x32xf32> -> vector<2x16x32xf32>
    %7 = tpu.concatenate %3, %0, %6 in 2 : vector<2x16x32xf32>, vector<2x16x32xf32>, vector<2x16x32xf32> -> vector<2x16x96xf32>
    %8 = vector.shape_cast %7 : vector<2x16x96xf32> to vector<32x96xf32>
    %c0_3 = arith.constant 0 : index
    %c0_4 = arith.constant 0 : index
    %9 = vector.load %arg3[%c0_3, %c0_4] : memref<96x64xf32, #tpu.memory_space<vmem>>, vector<96x64xf32>
    %cst_5 = arith.constant dense<0.000000e+00> : vector<32x64xf32>
    %10 = tpu.matmul %8, %9, %cst_5 {dimension_numbers = #tpu.dot_dimension_numbers<[1], [0], [0], [1], [0, 0, 1, 1], [], []>} : vector<32x96xf32>, vector<96x64xf32>, vector<32x64xf32> -> vector<32x64xf32>
    %11 = vector.shape_cast %10 : vector<32x64xf32> to vector<2x16x64xf32>
    %c0_6 = arith.constant 0 : index
    %c0_7 = arith.constant 0 : index
    %c0_8 = arith.constant 0 : index
    %12 = vector.load %arg2[%c0_6, %c0_7, %c0_8] : memref<2x1x64xf32, #tpu.memory_space<vmem>>, vector<2x1x64xf32>
    %13 = vector.broadcast %12 : vector<2x1x64xf32> to vector<2x16x64xf32>
    %14 = arith.addf %11, %13 : vector<2x16x64xf32>
    %15 = vector.extract_strided_slice %14 {offsets = [0, 0, 0], sizes = [2, 16, 32], strides = [1, 1, 1]} : vector<2x16x64xf32> to vector<2x16x32xf32>
    %16 = math.tanh %15 : vector<2x16x32xf32>
    %17 = vector.extract_strided_slice %14 {offsets = [0, 0, 32], sizes = [2, 16, 32], strides = [1, 1, 1]} : vector<2x16x64xf32> to vector<2x16x32xf32>
    %cst_9 = arith.constant 5.000000e-01 : f32
    %18 = vector.broadcast %cst_9 : f32 to vector<2x16x32xf32>
    %19 = arith.mulf %18, %17 : vector<2x16x32xf32>
    %20 = math.tanh %19 : vector<2x16x32xf32>
    %cst_10 = arith.constant 5.000000e-01 : f32
    %21 = vector.broadcast %cst_10 : f32 to vector<2x16x32xf32>
    %22 = arith.mulf %21, %20 : vector<2x16x32xf32>
    %cst_11 = arith.constant 5.000000e-01 : f32
    %23 = vector.broadcast %cst_11 : f32 to vector<2x16x32xf32>
    %24 = arith.addf %22, %23 : vector<2x16x32xf32>
    %25 = arith.mulf %16, %24 : vector<2x16x32xf32>
    %26 = vector.shape_cast %25 : vector<2x16x32xf32> to vector<32x32xf32>
    %c0_12 = arith.constant 0 : index
    %c0_13 = arith.constant 0 : index
    %27 = vector.load %arg4[%c0_12, %c0_13] : memref<32x48xf32, #tpu.memory_space<vmem>>, vector<32x48xf32>
    %cst_14 = arith.constant dense<0.000000e+00> : vector<32x48xf32>
    %28 = tpu.matmul %26, %27, %cst_14 {dimension_numbers = #tpu.dot_dimension_numbers<[1], [0], [0], [1], [0, 0, 1, 1], [], []>} : vector<32x32xf32>, vector<32x48xf32>, vector<32x48xf32> -> vector<32x48xf32>
    %29 = vector.shape_cast %28 : vector<32x48xf32> to vector<2x16x48xf32>
    %30 = vector.extract_strided_slice %29 {offsets = [0, 0, 0], sizes = [2, 16, 32], strides = [1, 1, 1]} : vector<2x16x48xf32> to vector<2x16x32xf32>
    %31 = arith.addf %30, %0 : vector<2x16x32xf32>
    %32 = vector.extract_strided_slice %29 {offsets = [0, 0, 32], sizes = [2, 16, 16], strides = [1, 1, 1]} : vector<2x16x48xf32> to vector<2x16x16xf32>
    %33 = tpu.concatenate %31, %32 in 2 : vector<2x16x32xf32>, vector<2x16x16xf32> -> vector<2x16x48xf32>
    %c0_15 = arith.constant 0 : index
    %c0_16 = arith.constant 0 : index
    %c0_17 = arith.constant 0 : index
    %34 = vector.load %arg5[%c0_15, %c0_16, %c0_17] : memref<2x16x48xf32, #tpu.memory_space<vmem>>, vector<2x16x48xf32>
    tpu.vector_store %arg5[%c0_15, %c0_16, %c0_17], %33 {strides = array<i32>} : memref<2x16x48xf32, #tpu.memory_space<vmem>>, vector<2x16x48xf32>,
    return
  }
  func.func @transform_0(%arg0: i32) -> (i32, i32, i32) {
    %c0_i32 = arith.constant 0 : i32
    %c0_i32_0 = arith.constant 0 : i32
    %c0_i32_1 = arith.constant 0 : i32
    return %arg0, %c0_i32, %c0_i32_0 : i32, i32, i32
  }
  func.func @transform_1(%arg0: i32) -> (i32, i32, i32) {
    %c0_i32 = arith.constant 0 : i32
    %c0_i32_0 = arith.constant 0 : i32
    %c0_i32_1 = arith.constant 0 : i32
    return %arg0, %c0_i32, %c0_i32_0 : i32, i32, i32
  }
  func.func @transform_2(%arg0: i32) -> (i32, i32) {
    %c0_i32 = arith.constant 0 : i32
    %c0_i32_0 = arith.constant 0 : i32
    %c0_i32_1 = arith.constant 0 : i32
    return %c0_i32, %c0_i32_0 : i32, i32
  }
  func.func @transform_3(%arg0: i32) -> (i32, i32) {
    %c0_i32 = arith.constant 0 : i32
    %c0_i32_0 = arith.constant 0 : i32
    %c0_i32_1 = arith.constant 0 : i32
    return %c0_i32, %c0_i32_0 : i32, i32
  }
  func.func @transform_4(%arg0: i32) -> (i32, i32, i32) {
    %c0_i32 = arith.constant 0 : i32
    %c0_i32_0 = arith.constant 0 : i32
    %c0_i32_1 = arith.constant 0 : i32
    return %arg0, %c0_i32, %c0_i32_0 : i32, i32, i32
  }
}

</mosaic_0001>

<bundles_post_ra>
// kernel: tpu_custom_call.1
= control target key start
LH: loop header
LB: loop body
LE: loop exit
PB: predicated region body
PF: predicated region fallthrough
CT: control target
= control target key end

     0   :  { %vm39_vm0 = vcmask 1045504   ;;  %s506_s19 = smov 32   ;;  %s507_s30 = smov 64   ;;  %s670_s0 = inlined_call_operand.vmem [shape: f32[2,16,32], index: 0, kind: input, shape index: {}]   ;;  %s671_s1 = inlined_call_operand.vmem [shape: f32[2,1,64], index: 1, kind: input, shape index: {}]   ;;  %s672_s2 = inlined_call_operand.vmem [shape: f32[96,64], index: 2, kind: input, shape index: {}]   ;;  %s673_s3 = inlined_call_operand.vmem [shape: f32[32,48], index: 3, kind: input, shape index: {}]   ;;  %s674_s4 = inlined_call_operand.hbm [shape: f32[2,16,48], index: 4, kind: output, shape index: {}]  }
   0x1   :  { %v540_v0 = vld [vmem:[%s670_s0] sm:$0xff]  ;;  %v545_v1 = vld [vmem:[%s670_s0 + $0x8] sm:$0xff]  ;;  %v97_v4 = vld [vmem:[%s672_s2 + $0x58] sm:$0xff] }
   0x2   :  { %50 = vrot.lane.b32.xlu0 %v540_v0, %s506_s19  ;;  %v40_v2 = vrot.slane %v540_v0, 2  ;;  %v41_v3 = vrot.slane %v545_v1, 2  ;;  %v96_v5 = vld [vmem:[%s672_s2 + $0x50] sm:$0xff]  ;;  %418 = vmatprep.subr.mxu0 %v97_v4  ;;  %v566_v8 = vld [vmem:[%s670_s0 + $0x18] sm:$0xff]  ;;  %v95_v9 = vld [vmem:[%s672_s2 + $0x48] sm:$0xff] }
   0x3   :  { %v561_v7 = vld [vmem:[%s670_s0 + $0x10] sm:$0xff]  ;;  %419 = vmatpush3.msra.mxu0 %v97_v4  ;;  %v94_v11 = vld [vmem:[%s672_s2 + $0x40] sm:$0xff] }
   0x4   :  { %v42_v6 = vsel %vm39_vm0, %v40_v2, %v41_v3  ;;  %420 = vmatprep.subr.mxu0 %v96_v5  ;;  %v48_v10 = vsel %vm39_vm0, %v41_v3, 0.0 }
   0x5   :  { %64 = vrot.lane.b32.xlu1 %v42_v6, %s507_s30  ;;  %421 = vmatpush3.msra.mxu0 %v96_v5 }
   0x6   :  { %52 = vrot.lane.b32.xlu0 %v545_v1, %s506_s19 }
   0x7   :  { %9 = vsyncpa [#allocation3], 0  ;;  %v43_v12 = vrot.slane %v561_v7, 2  ;;  %v44_v13 = vrot.slane %v566_v8, 2  ;;  %422 = vmatprep.subr.mxu0 %v95_v9  ;;  %v93_v14 = vld [vmem:[%s672_s2 + $0x38] sm:$0xff]  ;;  %v92_v15 = vld [vmem:[%s672_s2 + $0x30] sm:$0xff] }
   0x8   :  { %423 = vmatpush3.msra.mxu0 %v95_v9  ;;  %v91_v17 = vld [vmem:[%s672_s2 + $0x28] sm:$0xff]  ;;  %v90_v19 = vld [vmem:[%s672_s2 + $0x20] sm:$0xff]  ;;  %v89_v20 = vld [vmem:[%s672_s2 + $0x18] sm:$0xff]  ;;  %v27_v24 = vrot.slane %v540_v0, 6  ;;  %vm26_vm1 = vcmask 1041408   ;;  %vm76_vm2 = vcmask 261120  }
   0x9   :  { %66 = vrot.lane.b32.xlu1 %v48_v10, %s507_s30  ;;  %424 = vmatprep.subr.mxu0 %v94_v11  ;;  %v45_v16 = vsel %vm39_vm0, %v43_v12, %v44_v13  ;;  %v49_v18 = vsel %vm39_vm0, %v44_v13, 0.0  ;;  %v88_v21 = vld [vmem:[%s672_s2 + $0x10] sm:$0xff]  ;;  %v87_v22 = vld [vmem:[%s672_s2 + $0x8] sm:$0xff]  ;;  %v86_v23 = vld [vmem:[%s672_s2] sm:$0xff]  ;;  %v28_v26 = vrot.slane %v545_v1, 6  ;;  %vm81_vm3 = vcmask 523264  }
   0xa   :  { %54 = vrot.lane.b32.xlu0 %v561_v7, %s506_s19  ;;  %425 = vmatpush3.msra.mxu0 %v94_v11  ;;  %v37_v25 = vsel %vm26_vm1, 0.0, %v27_v24  ;;  %vm98_vm4 = vcmask 785408   ;;  %v30_v31 = vrot.slane %v561_v7, 6  ;;  %v31_v37 = vrot.slane %v566_v8, 6  ;;  %v257_v48 = vld [vmem:[%s673_s3 + $0x18] sm:$0xff]  ;;  %v256_v49 = vld [vmem:[%s673_s3 + $0x10] sm:$0xff] }
   0xb   :  { %426 = vmatprep.subr.mxu0 %v93_v14  ;;  %v29_v29 = vsel %vm26_vm1, %v27_v24, %v28_v26  ;;  %448 = vmatprep.subr.mxu1 %v257_v48  ;;  %v388_v50 = vld [vmem:[%s671_s1] ss:$0 sm:$0xff]  ;;  %v389_v57 = vld [vmem:[%s671_s1 + $0x1] ss:$0 sm:$0xff]  ;;  %v255_v61 = vld [vmem:[%s673_s3 + $0x8] sm:$0xff]  ;;  %s508_s1 = smov 96  }
   0xc   :  { %427 = vmatpush3.msra.mxu0 %v93_v14  ;;  %v38_v36 = vsel %vm26_vm1, 0.0, %v30_v31  ;;  %v32_v42 = vsel %vm26_vm1, %v30_v31, %v31_v37  ;;  %449 = vmatpush3.msra.mxu1 %v257_v48  ;;  %v254_v2 = vld [vmem:[%s673_s3] sm:$0xff]  ;;  %vm363_vm5 = vcmask 392192   ;;  %s509_s3 = smov [#allocation2]  }
   0xd   :  { %56 = vrot.lane.b32.xlu1 %v566_v8, %s506_s19  ;;  %428 = vmatprep.subr.mxu0 %v92_v15  ;;  %s373_s0 = sshll.u32 %s509_s3, 4  ;;  %s374_s0 = int_to_ptr.vmem [resolvable:$true] %s373_s0 }
   0xe   :  { %68 = vrot.lane.b32.xlu0 %v45_v16, %s507_s30  ;;  %429 = vmatpush3.msra.mxu0 %v92_v15  ;;  %s484_s7 = scalar_lea.vmem %s374_s0, 512  ;;  %p489_p1 = scmp.lt.s32.totalorder %s374_s0, %s374_s0 }
   0xf   :  { %430 = vmatprep.subr.mxu0 %v91_v17  ;;  %450 = vmatprep.subr.mxu1 %v256_v49  ;;  %p485_p0 = scmp.ne.s32.totalorder %s374_s0, %s484_s7  ;;  %p490_p2 = scmp.lt.s32.totalorder %s484_s7, %s484_s7 }
  0x10   :  { %431 = vmatpush3.msra.mxu0 %v91_v17  ;;  %451 = vmatpush3.msra.mxu1 %v256_v49 }
  0x11   :  { %70 = vrot.lane.b32.xlu1 %v49_v18, %s507_s30  ;;  %432 = vmatprep.subr.mxu0 %v90_v19  ;;  %p491_p3 = por %p490_p2, %p489_p1 }
  0x12   :  { %433 = vmatpush3.msra.mxu0 %v90_v19  ;;  %452 = vmatprep.subr.mxu1 %v255_v61 }
  0x13   :  { %434 = vmatprep.subr.mxu0 %v89_v20  ;;  %453 = vmatpush3.msra.mxu1 %v255_v61  ;;  %p492_p4 = pnand %p491_p3, %p485_p0 }
  0x14   :  { %435 = vmatpush3.msra.mxu0 %v89_v20  ;;  %454 = vmatprep.subr.mxu1 %v254_v2 }
  0x15   :  { %436 = vmatprep.subr.mxu0 %v88_v21  ;;  %455 = vmatpush3.msra.mxu1 %v254_v2 }
  0x16   :  { %437 = vmatpush3.msra.mxu0 %v88_v21 }
  0x17   :  { %438 = vmatprep.subr.mxu0 %v87_v22 }
  0x18   :  { %439 = vmatpush3.msra.mxu0 %v87_v22 }
  0x19   :  { %440 = vmatprep.subr.mxu0 %v86_v23 }
  0x1a   :  { %441 = vmatpush3.msra.mxu0 %v86_v23 }
  0x74   :  { %v51_v27 = vpop.permute.xlu0 %50 }
  0x75   :  { %v77_v28 = vsel %vm76_vm2, %v37_v25, %v51_v27 }
  0x77   :  { %v65_v30 = vpop.permute.xlu1 %64 }
  0x78   :  { %v53_v32 = vpop.permute.xlu0 %52  ;;  %v82_v33 = vsel %vm81_vm3, %v77_v28, %v65_v30 }
  0x79   :  { %v78_v34 = vsel %vm76_vm2, %v29_v29, %v53_v32  ;;  %442 = vmatprep.mubr.msk.f32.mxu0 %vm98_vm4, %v82_v33 }
  0x7b   :  { %v67_v35 = vpop.permute.xlu1 %66 }
  0x7c   :  { %v83_v38 = vsel %vm81_vm3, %v78_v34, %v67_v35  ;;  %v55_v39 = vpop.permute.xlu0 %54 }
  0x7d   :  { %443 = vmatmul.mubr.msk.f32.vlgmr.msra.gmra.mxu0 %vm98_vm4, %v83_v38  ;;  %v79_v40 = vsel %vm76_vm2, %v38_v36, %v55_v39 }
  0x7f   :  { %v57_v41 = vpop.permute.xlu1 %56 }
  0x80   :  { %v69_v43 = vpop.permute.xlu0 %68  ;;  %v80_v45 = vsel %vm76_vm2, %v32_v42, %v57_v41 }
  0x81   :  { %v84_v44 = vsel %vm81_vm3, %v79_v40, %v69_v43 }
  0x82   :  { %445 = vmatprep.mubr.msk.f32.mxu0 %vm98_vm4, %v84_v44 }
  0x83   :  { %v71_v46 = vpop.permute.xlu1 %70 }
  0x84   :  { %v85_v47 = vsel %vm81_vm3, %v80_v45, %v71_v46 }
  0x85   :  { %446 = vmatmul.mubr.msk.f32.gmra.mxu0 %vm98_vm4, %v85_v47 }
 0x13d   :  { %v444_v51 = vpop.f32.mrf.mxu0 }
 0x13e   :  { %v211_v52 = vadd.f32 %v444_v51, %v388_v50 }
 0x13f   :  { %v177_v53 = vpop.f32.mrf.mxu0 }
 0x140   :  { %v219_v54 = vmul.f32 0.5, %v211_v52  ;;  %v210_v55 = vadd.f32 %v388_v50, %v177_v53 }
 0x142   :  { %468 = vtanh.f32 %v219_v54  ;;  %v218_v56 = vmul.f32 0.5, %v210_v55 }
 0x144   :  { %470 = vtanh.f32 %v218_v56 }
 0x145   :  { %v447_v58 = vpop.f32.mrf.mxu0 }
 0x146   :  { %v213_v59 = vadd.f32 %v447_v58, %v389_v57 }
 0x147   :  { %v187_v60 = vpop.f32.mrf.mxu0 }
 0x148   :  { %v221_v62 = vmul.f32 0.5, %v213_v59  ;;  %v212_v63 = vadd.f32 %v389_v57, %v187_v60 }
 0x14a   :  { %472 = vtanh.f32 %v221_v62  ;;  %v220_v3 = vmul.f32 0.5, %v212_v63 }
 0x14c   :  { %474 = vtanh.f32 %v220_v3 }
 0x14d   :  { %476 = vtanh.f32 %v210_v55 }
 0x14e   :  { %478 = vtanh.f32 %v211_v52 }
 0x14f   :  { %v469_v4 = vpop.eup %468  ;;  %480 = vtanh.f32 %v212_v63 }
 0x150   :  { %v227_v5 = vmul.f32 0.5, %v469_v4  ;;  %482 = vtanh.f32 %v213_v59 }
 0x151   :  { %v471_v6 = vpop.eup %470 }
 0x152   :  { %v231_v9 = vadd.f32 0.5, %v227_v5  ;;  %v226_v10 = vmul.f32 0.5, %v471_v6 }
 0x154   :  { %240 = vrot.lane.b32.xlu1 %v231_v9, %s508_s1  ;;  %v230_v11 = vadd.f32 0.5, %v226_v10 }
 0x156   :  { %238 = vrot.lane.b32.xlu0 %v230_v11, %s508_s1 }
 0x157   :  { %v473_v12 = vpop.eup %472 }
 0x158   :  { %v229_v13 = vmul.f32 0.5, %v473_v12 }
 0x159   :  { %v475_v14 = vpop.eup %474 }
 0x15a   :  { %v233_v15 = vadd.f32 0.5, %v229_v13  ;;  %v228_v16 = vmul.f32 0.5, %v475_v14  ;;  %v477_v19 = vpop.eup %476 }
 0x15b   :  { %v479_v21 = vpop.eup %478 }
 0x15c   :  { %244 = vrot.lane.b32.xlu1 %v233_v15, %s508_s1  ;;  %v232_v17 = vadd.f32 0.5, %v228_v16  ;;  %v481_v25 = vpop.eup %480 }
 0x15d   :  { %v483_v27 = vpop.eup %482 }
 0x15e   :  { %242 = vrot.lane.b32.xlu0 %v232_v17, %s508_s1 }
 0x1c6   :  { %v241_v18 = vpop.permute.xlu1 %240 }
 0x1c7   :  { %v251_v23 = vmul.f32 %v479_v21, %v241_v18 }
 0x1c8   :  { %v239_v20 = vpop.permute.xlu0 %238 }
 0x1c9   :  { %v250_v22 = vmul.f32 %v477_v19, %v239_v20 }
 0x1cb   :  { %456 = vmatprep.mubr.msk.f32.mxu1 %vm76_vm2, %v250_v22 }
 0x1cc   :  { %457 = vmatmul.mubr.msk.f32.vlgmr.msra.gmra.mxu1 %vm76_vm2, %v251_v23 }
 0x1ce   :  { %v245_v24 = vpop.permute.xlu1 %244 }
 0x1cf   :  { %v253_v29 = vmul.f32 %v483_v27, %v245_v24 }
 0x1d0   :  { %v243_v26 = vpop.permute.xlu0 %242 }
 0x1d1   :  { %v252_v28 = vmul.f32 %v481_v25, %v243_v26 }
 0x1d3   :  { %459 = vmatprep.mubr.msk.f32.mxu1 %vm76_vm2, %v252_v28 }
 0x1d4   :  { %460 = vmatmul.mubr.msk.f32.gmra.mxu1 %vm76_vm2, %v253_v29 }
 0x28c   :  { %v458_v30 = vpop.f32.mrf.mxu1 }
 0x28d   :  { %v356_v31 = vadd.f32 %v458_v30, %v545_v1 }
 0x28e   :  { %v336_v32 = vpop.f32.mrf.mxu1 }
 0x28f   :  { %v360_v33 = vsel %vm76_vm2, %v356_v31, %v458_v30  ;;  %v355_v34 = vadd.f32 %v336_v32, %v540_v0 }
 0x290   :  { %365 = vst.msk [vmem:[#allocation2 + $0x8] sm:$0xff] %vm363_vm5, %v360_v33 }
 0x291   :  { %v359_v35 = vsel %vm76_vm2, %v355_v34, %v336_v32 }
 0x292   :  { %364 = vst.msk [vmem:[#allocation2] sm:$0xff] %vm363_vm5, %v359_v35 }
 0x294   :  { %v461_v36 = vpop.f32.mrf.mxu1 }
 0x295   :  { %v358_v37 = vadd.f32 %v461_v36, %v566_v8 }
 0x296   :  { %v346_v38 = vpop.f32.mrf.mxu1 }
 0x297   :  { %v362_v1 = vsel %vm76_vm2, %v358_v37, %v461_v36  ;;  %v357_v39 = vadd.f32 %v346_v38, %v561_v7 }
 0x298   :  { %367 = vst.msk [vmem:[#allocation2 + $0x18] sm:$0xff] %vm363_vm5, %v362_v1 }
 0x299   :  { %v361_v0 = vsel %vm76_vm2, %v357_v39, %v346_v38 }
 0x29a   :  { %366 = vst.msk [vmem:[#allocation2 + $0x10] sm:$0xff] %vm363_vm5, %v361_v0 }
 0x29b   :  { %495 = shalt.err (!%p492_p4)
}
 0x29c   :  { %s510_s8 = smov 128   ;;  %s511_s9 = smov 8  }
 0x29d   :  { %379 = dma.vmem_to_hbm [thread:$0]  %s374_s0, 512, %s674_s4, [#allocation3], %s510_s8, %s510_s8, %s511_s9  }
 0x29e   :  { %504 = dma.done.wait [#allocation3], 512  }
 0x29f   :  { %505 = vsyncadd [#allocation3], 4294966784 }
 0x2a0   :  { %383 = vsyncpa [#allocation3], 1 }

</bundles_post_ra>
